<compile_context>
chip_gen: v7x
topology: tpu7x:2x2x1
jax: 0.10.0
libtpu: 0.0.40
codegen_flags: <defaults>
</compile_context>

<pallas_src>
import functools

import jax
import jax.numpy as jnp
from jax import lax
from jax.experimental import pallas as pl
from jax.experimental.pallas import tpu as pltpu


def adaptive_linear_kernel(x_ref, w_ref, b_ref, o_ref, acc_ref, *, inv_hw):
    """One (b, k) grid step.

    x_ref  : (Bblk, C, hw_tile)  current spatial tile of the input
    w_ref  : (O, C)              linear weight, native PyTorch layout
    b_ref  : (1, O)              linear bias
    o_ref  : (Bblk, O)           output block (resident across the k axis)
    acc_ref: (Bblk, C) f32       partial pooled-sum accumulator (scratch)
    """
    k = pl.program_id(1)

    @pl.when(k == 0)
    def _init():
        acc_ref[...] = jnp.zeros_like(acc_ref)

    x = x_ref[...]
    if x.dtype != jnp.float32:           # static dtype check; no-op for f32 inputs
        x = x.astype(jnp.float32)
    # Partial pooled SUM over this spatial tile (XLU cross-lane reduce);
    # the 1/(H*W) scale is folded in exactly once at the end.
    acc_ref[...] += jnp.sum(x, axis=-1)

    @pl.when(k == pl.num_programs(1) - 1)
    def _finalize():
        pooled = acc_ref[...] * inv_hw   # (Bblk, C) global average
        w = w_ref[...]
        if w.dtype != jnp.float32:
            w = w.astype(jnp.float32)
        bias = b_ref[...]
        if bias.dtype != jnp.float32:
            bias = bias.astype(jnp.float32)

        n_out, n_in = w.shape
        if n_in <= 16:
            # Tiny contraction (e.g. C=4): a (Bblk,C)@(C,O) matmul badly
            # underfills the MXU; do C broadcast FMAs on the VPU instead.
            wt = w.T                                    # small one-time in-VMEM transpose
            out = jnp.zeros(o_ref.shape, jnp.float32)
            for c in range(n_in):                       # static unroll, C is tiny
                out = out + pooled[:, c:c + 1] * wt[c:c + 1, :]
        else:
            # Contract over C with the weight in its native (O, C) layout
            # (trans_b) -> MXU path, no transposed copy of the weight needed.
            out = lax.dot_general(
                pooled, w,
                dimension_numbers=(((1,), (1,)), ((), ())),
                preferred_element_type=jnp.float32)

        o_ref[...] = (out + bias).astype(o_ref.dtype)


def _choose_hw_tile(hw, b_blk, c, itemsize, max_tile_bytes):
    """Largest spatial tile that is lane-aligned (multiple of 128), divides HW,
    and keeps one x block under max_tile_bytes (so double-buffering fits under
    the scoped-VMEM default on v5e/v6e/v7x)."""
    if hw % 128 != 0:
        return hw                                   # block == full dim is always legal
    budget_lanes = max(128, max_tile_bytes // max(1, b_blk * c * itemsize))
    t = (min(hw, budget_lanes) // 128) * 128
    while t > 128 and hw % t != 0:
        t -= 128
    return t if hw % t == 0 else hw


def adaptive_linear(x_nchw, weight, bias, *, hw_tile=None, max_tile_bytes=4 << 20):
    """y = Linear(GlobalAvgPool2d(x).view(B, C)).

    x_nchw: (B, C, H, W); weight: (O, C) [PyTorch nn.Linear layout]; bias: (O,).
    """
    B, C, H, W = x_nchw.shape
    O, C_w = weight.shape
    assert C_w == C
    HW = H * W

    x_flat = x_nchw.reshape(B, C, HW)               # glue reshape, no compute
    b2 = bias.reshape(1, O)                         # keep 2D for TPU layout

    b_blk = min(B, 8)
    if hw_tile is None:
        hw_tile = _choose_hw_tile(HW, b_blk, C, x_flat.dtype.itemsize, max_tile_bytes)
    assert HW % hw_tile == 0, "hw_tile must evenly divide H*W (reduction padding)"
    grid = (pl.cdiv(B, b_blk), HW // hw_tile)       # reduction axis last

    kernel = functools.partial(adaptive_linear_kernel, inv_hw=float(1.0 / HW))

    flops = B * C * HW + 2 * B * C * O
    bytes_accessed = (x_flat.size * x_flat.dtype.itemsize
                      + weight.size * weight.dtype.itemsize
                      + bias.size * bias.dtype.itemsize
                      + B * O * x_flat.dtype.itemsize)

    return pl.pallas_call(
        kernel,
        out_shape=jax.ShapeDtypeStruct((B, O), x_nchw.dtype),
        grid_spec=pltpu.PrefetchScalarGridSpec(
            num_scalar_prefetch=0,
            grid=grid,
            in_specs=[
                pl.BlockSpec((b_blk, C, hw_tile), lambda b, k: (b, 0, k)),
                pl.BlockSpec((O, C), lambda b, k: (0, 0)),
                pl.BlockSpec((1, O), lambda b, k: (0, 0)),
            ],
            out_specs=pl.BlockSpec((b_blk, O), lambda b, k: (b, 0)),
            scratch_shapes=[pltpu.VMEM((b_blk, C), jnp.float32)],
        ),
        compiler_params=pltpu.CompilerParams(
            dimension_semantics=("parallel", "arbitrary"),
            vmem_limit_bytes=32 << 20,
        ),
        cost_estimate=pl.CostEstimate(
            flops=flops, transcendentals=0, bytes_accessed=bytes_accessed),
    )(x_flat, weight, b2)


if __name__ == "__main__":
    # Shapes implied by the module: input_channels=4, output_size=32,
    # input x of shape (batch=2, channels=4, 16, 16).
    B, C, H, W, O = 2, 4, 16, 16, 32

    key = jax.random.PRNGKey(0)
    kx, kw, kb = jax.random.split(key, 3)

    x = jax.random.normal(kx, (B, C, H, W), dtype=jnp.float32)
    bound = 1.0 / (C ** 0.5)
    weight = jax.random.uniform(kw, (O, C), minval=-bound, maxval=bound, dtype=jnp.float32)
    bias = jax.random.uniform(kb, (O,), minval=-bound, maxval=bound, dtype=jnp.float32)

    # Exercise the multi-step reduction/accumulator path (hw_tile=128 -> 2 k-steps)
    # and the auto-tiled path.
    y_tiled = jax.block_until_ready(adaptive_linear(x, weight, bias, hw_tile=128))
    y_auto = jax.block_until_ready(adaptive_linear(x, weight, bias))

    # Pure-JAX reference.
    ref = jnp.mean(x, axis=(2, 3)) @ weight.T + bias
    assert y_tiled.shape == (B, O)
    assert jnp.allclose(y_tiled, ref, atol=1e-5, rtol=1e-5)
    assert jnp.allclose(y_auto, ref, atol=1e-5, rtol=1e-5)

    print("KERNEL_OK")
</pallas_src>

<mosaic_0001>
module attributes {stable_mosaic.version = 11 : i64} {
  func.func @adaptive_linear_kernel(%arg0: i32, %arg1: i32, %arg2: memref<2x4x128xf32, #tpu.memory_space<vmem>>, %arg3: memref<32x4xf32, #tpu.memory_space<vmem>>, %arg4: memref<1x32xf32, #tpu.memory_space<vmem>>, %arg5: memref<2x32xf32, #tpu.memory_space<vmem>>, %arg6: memref<2x4xf32, #tpu.memory_space<vmem>>) attributes {dimension_semantics = [#tpu.dimension_semantics<parallel>, #tpu.dimension_semantics<arbitrary>], iteration_bounds = array<i64: 1, 2>, scalar_prefetch = 0 : i64, scratch_operands = 1 : i64, tpu.core_type = #tpu.core_type<tc>, window_params = [{transform_indices = @transform_0, window_bounds = array<i64: 2, 4, 128>}, {pipeline_mode = #tpu.pipeline_mode<synchronous>, transform_indices = @transform_1, window_bounds = array<i64: 32, 4>}, {pipeline_mode = #tpu.pipeline_mode<synchronous>, transform_indices = @transform_2, window_bounds = array<i64: 1, 32>}, {transform_indices = @transform_3, window_bounds = array<i64: 2, 32>}]} {
    %c0_i32 = arith.constant 0 : i32
    %0 = arith.cmpi eq, %arg1, %c0_i32 : i32
    %1 = arith.extui %0 : i1 to i32
    %c0_i32_0 = arith.constant 0 : i32
    %2 = arith.cmpi ne, %1, %c0_i32_0 : i32
    scf.if %2 {
      %cst_8 = arith.constant 0.000000e+00 : f32
      %11 = vector.broadcast %cst_8 : f32 to vector<2x4xf32>
      %c0_9 = arith.constant 0 : index
      %c0_10 = arith.constant 0 : index
      %12 = vector.load %arg6[%c0_9, %c0_10] : memref<2x4xf32, #tpu.memory_space<vmem>>, vector<2x4xf32>
      tpu.vector_store %arg6[%c0_9, %c0_10], %11 {strides = array<i32>} : memref<2x4xf32, #tpu.memory_space<vmem>>, vector<2x4xf32>,
    } else {
    }
    %c0 = arith.constant 0 : index
    %c0_1 = arith.constant 0 : index
    %c0_2 = arith.constant 0 : index
    %3 = vector.load %arg2[%c0, %c0_1, %c0_2] : memref<2x4x128xf32, #tpu.memory_space<vmem>>, vector<2x4x128xf32>
    %c0_3 = arith.constant 0 : index
    %c0_4 = arith.constant 0 : index
    %4 = vector.load %arg6[%c0_3, %c0_4] : memref<2x4xf32, #tpu.memory_space<vmem>>, vector<2x4xf32>
    %cst = arith.constant dense<0.000000e+00> : vector<2x4xf32>
    %5 = vector.multi_reduction <add>, %3, %cst [2] : vector<2x4x128xf32> to vector<2x4xf32>
    %6 = arith.addf %4, %5 : vector<2x4xf32>
    %c0_5 = arith.constant 0 : index
    %c0_6 = arith.constant 0 : index
    %7 = vector.load %arg6[%c0_5, %c0_6] : memref<2x4xf32, #tpu.memory_space<vmem>>, vector<2x4xf32>
    tpu.vector_store %arg6[%c0_5, %c0_6], %6 {strides = array<i32>} : memref<2x4xf32, #tpu.memory_space<vmem>>, vector<2x4xf32>,
    %c1_i32 = arith.constant 1 : i32
    %8 = arith.cmpi eq, %arg1, %c1_i32 : i32
    %9 = arith.extui %8 : i1 to i32
    %c0_i32_7 = arith.constant 0 : i32
    %10 = arith.cmpi ne, %9, %c0_i32_7 : i32
    scf.if %10 {
      %c0_8 = arith.constant 0 : index
      %c0_9 = arith.constant 0 : index
      %11 = vector.load %arg6[%c0_8, %c0_9] : memref<2x4xf32, #tpu.memory_space<vmem>>, vector<2x4xf32>
      %cst_10 = arith.constant 3.906250e-03 : f32
      %12 = vector.broadcast %cst_10 : f32 to vector<2x4xf32>
      %13 = arith.mulf %11, %12 : vector<2x4xf32>
      %c0_11 = arith.constant 0 : index
      %c0_12 = arith.constant 0 : index
      %14 = vector.load %arg3[%c0_11, %c0_12] : memref<32x4xf32, #tpu.memory_space<vmem>>, vector<32x4xf32>
      %c0_13 = arith.constant 0 : index
      %c0_14 = arith.constant 0 : index
      %15 = vector.load %arg4[%c0_13, %c0_14] : memref<1x32xf32, #tpu.memory_space<vmem>>, vector<1x32xf32>
      %16 = tpu.transpose %14, [1, 0] : vector<32x4xf32> -> vector<4x32xf32>
      %cst_15 = arith.constant 0.000000e+00 : f32
      %17 = vector.broadcast %cst_15 : f32 to vector<2x32xf32>
      %18 = vector.extract_strided_slice %13 {offsets = [0, 0], sizes = [2, 1], strides = [1, 1]} : vector<2x4xf32> to vector<2x1xf32>
      %19 = vector.extract_strided_slice %16 {offsets = [0, 0], sizes = [1, 32], strides = [1, 1]} : vector<4x32xf32> to vector<1x32xf32>
      %20 = vector.broadcast %18 : vector<2x1xf32> to vector<2x32xf32>
      %21 = vector.broadcast %19 : vector<1x32xf32> to vector<2x32xf32>
      %22 = arith.mulf %20, %21 : vector<2x32xf32>
      %23 = arith.addf %17, %22 : vector<2x32xf32>
      %24 = vector.extract_strided_slice %13 {offsets = [0, 1], sizes = [2, 1], strides = [1, 1]} : vector<2x4xf32> to vector<2x1xf32>
      %25 = vector.extract_strided_slice %16 {offsets = [1, 0], sizes = [1, 32], strides = [1, 1]} : vector<4x32xf32> to vector<1x32xf32>
      %26 = vector.broadcast %24 : vector<2x1xf32> to vector<2x32xf32>
      %27 = vector.broadcast %25 : vector<1x32xf32> to vector<2x32xf32>
      %28 = arith.mulf %26, %27 : vector<2x32xf32>
      %29 = arith.addf %23, %28 : vector<2x32xf32>
      %30 = vector.extract_strided_slice %13 {offsets = [0, 2], sizes = [2, 1], strides = [1, 1]} : vector<2x4xf32> to vector<2x1xf32>
      %31 = vector.extract_strided_slice %16 {offsets = [2, 0], sizes = [1, 32], strides = [1, 1]} : vector<4x32xf32> to vector<1x32xf32>
      %32 = vector.broadcast %30 : vector<2x1xf32> to vector<2x32xf32>
      %33 = vector.broadcast %31 : vector<1x32xf32> to vector<2x32xf32>
      %34 = arith.mulf %32, %33 : vector<2x32xf32>
      %35 = arith.addf %29, %34 : vector<2x32xf32>
      %36 = vector.extract_strided_slice %13 {offsets = [0, 3], sizes = [2, 1], strides = [1, 1]} : vector<2x4xf32> to vector<2x1xf32>
      %37 = vector.extract_strided_slice %16 {offsets = [3, 0], sizes = [1, 32], strides = [1, 1]} : vector<4x32xf32> to vector<1x32xf32>
      %38 = vector.broadcast %36 : vector<2x1xf32> to vector<2x32xf32>
      %39 = vector.broadcast %37 : vector<1x32xf32> to vector<2x32xf32>
      %40 = arith.mulf %38, %39 : vector<2x32xf32>
      %41 = arith.addf %35, %40 : vector<2x32xf32>
      %42 = vector.broadcast %15 : vector<1x32xf32> to vector<2x32xf32>
      %43 = arith.addf %41, %42 : vector<2x32xf32>
      %c0_16 = arith.constant 0 : index
      %c0_17 = arith.constant 0 : index
      %44 = vector.load %arg5[%c0_16, %c0_17] : memref<2x32xf32, #tpu.memory_space<vmem>>, vector<2x32xf32>
      tpu.vector_store %arg5[%c0_16, %c0_17], %43 {strides = array<i32>} : memref<2x32xf32, #tpu.memory_space<vmem>>, vector<2x32xf32>,
    } else {
    }
    return
  }
  func.func @transform_0(%arg0: i32, %arg1: i32) -> (i32, i32, i32) {
    %c0_i32 = arith.constant 0 : i32
    %c0_i32_0 = arith.constant 0 : i32
    return %arg0, %c0_i32, %arg1 : i32, i32, i32
  }
  func.func @transform_1(%arg0: i32, %arg1: i32) -> (i32, i32) {
    %c0_i32 = arith.constant 0 : i32
    %c0_i32_0 = arith.constant 0 : i32
    %c0_i32_1 = arith.constant 0 : i32
    return %c0_i32, %c0_i32_0 : i32, i32
  }
  func.func @transform_2(%arg0: i32, %arg1: i32) -> (i32, i32) {
    %c0_i32 = arith.constant 0 : i32
    %c0_i32_0 = arith.constant 0 : i32
    %c0_i32_1 = arith.constant 0 : i32
    return %c0_i32, %c0_i32_0 : i32, i32
  }
  func.func @transform_3(%arg0: i32, %arg1: i32) -> (i32, i32) {
    %c0_i32 = arith.constant 0 : i32
    %c0_i32_0 = arith.constant 0 : i32
    return %arg0, %c0_i32 : i32, i32
  }
}

</mosaic_0001>

<bundles_post_ra>
// kernel: tpu_custom_call.1
= control target key start
LH: loop header
LB: loop body
LE: loop exit
PB: predicated region body
PF: predicated region fallthrough
CT: control target
= control target key end

     0   :  { %8 = vsyncpa [#allocation5], 0  ;;  %s587_s12 = smov 0   ;;  %s589_s13 = smov 0   ;;  %s694_s0 = inlined_call_operand.vmem [shape: f32[2,4,256], index: 0, kind: input, shape index: {}]   ;;  %s695_s1 = inlined_call_operand.vmem [shape: f32[32,4], index: 1, kind: input, shape index: {}]   ;;  %s696_s2 = inlined_call_operand.vmem [shape: f32[1,32], index: 2, kind: input, shape index: {}]   ;;  %s697_s3 = inlined_call_operand.hbm [shape: f32[2,32], index: 3, kind: output, shape index: {}]  }
   0x1   :  { %s591_s14 = smov 0   ;;  %s593_s15 = smov 0  }
   0x2   :  { %s595_s16 = smov 0  }
   0x3 LB: > { %s419_s17 = sadd.s32 4294967295, %s559_s16   ;;  %s23_s18 = sadd.s32 1, %s555_s15  ;;  %s559_s16 = sphi %s595_s16, %s14_s16   ;;  %s555_s15 = sphi %s593_s15, %s702_s15   ;;  %s551_s14 = sphi %s591_s14, %s701_s14   ;;  %s547_s13 = sphi %s589_s13, %s700_s13   ;;  %s543_s12 = sphi %s587_s12, %s699_s12  }
   0x4   : > { %p24_p0 = scmp.ge.s32.totalorder %s23_s18, 2  ;;  %p42_p1 = scmp.ne.s32.totalorder %s547_s13, %s543_s12 }
   0x5   : > { %p43_p2 = scmp.eq.s32.totalorder %s559_s16, 0  ;;  %s35_s20 = sadd.s32 1, %s547_s13 }
   0x6   : > { %s704_s18 = smov (%p24_p0, %s23_s18), 0  ;;  %p421_p5 = scmp.ge.s32.totalorder %s559_s16, 2 }
   0x7   : > { %p44_p3 = por %p43_p2, %p42_p1  ;;  %s31_s19 = ssub.s32 %s555_s15, %s704_s18 }
   0x8   : > { %p33_p4 = scmp.eq.s32.totalorder %s31_s19, 0  ;;  %142 = sbr.rel (%p421_p5) target bundleno = 22 (0x16), region = 24 }
   0xa   : > { %s623_s21 = scalar_select %p33_p4, %s547_s13, %s35_s20  }
   0xf   : > { %145 = sbr.rel (!%p44_p3) target bundleno = 22 (0x16), region = 28  ;;  %s147_s22 = sand.u32 (%p44_p3), 1, %s547_s13  }
  0x10   : > { %s423_s23 = sshll.u32 (%p44_p3), %s555_s15, 2  ;;  %s422_s24 = sshll.u32 (%p44_p3), %s147_s22, 3 }
  0x11   : > { %s154_s27 = scalar_lea.vmem (%p44_p3), %s694_s0, %s423_s23  ;;  %s149_s28 = scalar_lea.vmem (%p44_p3), [#allocation3], %s422_s24 }
  0x12   : > { %v170_v0 = vld [vmem:[%s154_s27] sm:$0xf] (%p44_p3)  ;;  %v172_v1 = vld [vmem:[%s154_s27 + $0x8] sm:$0xf] (%p44_p3) }
  0x13   : > { %171 = vst [vmem:[%s149_s28] sm:$0xf] (%p44_p3), %v170_v0  ;;  %173 = vst [vmem:[%s149_s28 + $0x4] sm:$0xf] (%p44_p3), %v172_v1 }
  0x16 PF: > { %p424_p6 = scmp.ge.s32.totalorder %s559_s16, 1  ;;  %p199_p7 = scmp.lt.s32.totalorder %s559_s16, 3 }
  0x18   : > { %p200_p8 = pnand %p424_p6, %p199_p7 }
  0x19   : > { %s206_s29 = sand.u32 (!%p200_p8), 1, %s543_s12   ;;  %p426_p9 = scmp.ne.s32.totalorder (!%p200_p8), %s551_s14, 0 }
  0x1a   : > { %203 = sbr.rel (%p200_p8) target bundleno = 416 (0x1a0), region = 69  ;;  %s425_s30 = sshll.u32 (!%p200_p8), %s206_s29, 3 }
  0x1b   : > { %s208_s4 = scalar_lea.vmem (!%p200_p8), [#allocation3], %s425_s30 }
  0x21   : > { %228 = sbr.rel (%p426_p9) target bundleno = 40 (0x28), region = 77  ;;  %vm229_vm0 = vcmask (!%p426_p9), 25600   ;;  %v561_v2 = vmov (!%p426_p9), 0.0  }
  0x22   : > { %230 = vst.msk [vmem:[#allocation2] sm:$0x3] (!%p426_p9), %vm229_vm0, %v561_v2 }
  0x28 PF: > { %v231_v3 = vld [vmem:[%s208_s4] sm:$0xf]  ;;  %vm234_vm1 = vcmask 1043456   ;;  %v232_v4 = vld [vmem:[%s208_s4 + $0x4] sm:$0xf]  ;;  %v243_v7 = vlaneseq  ;;  %vm253_vm2 = vcmask 1041409  }
  0x29   : > { %v235_v5 = vsel %vm234_vm1, %v231_v3, 0.0  ;;  %v238_v6 = vsel %vm234_vm1, %v232_v4, 0.0  ;;  %v233_v14 = vld [vmem:[#allocation2] sm:$0x3]  ;;  %vm257_vm3 = vcmask 25600   ;;  %p427_p10 = scmp.ne.s32.totalorder %s551_s14, 1 }
  0x2a   : > { %236 = vadd.xlane.f32.xlu0 %v235_v5  ;;  %v244_v8 = vand.u32 127, %v243_v7  ;;  %v246_v9 = vshrl.u32 %v243_v7, 7  ;;  %v562_v19 = vmov (!%p427_p10), 2   ;;  %v563_v21 = vmov (!%p427_p10), 0   ;;  %v265_v24 = vld [vmem:[%s695_s1] sm:$0xff] (!%p427_p10)  ;;  %v266_v25 = vld [vmem:[%s695_s1 + $0x8] sm:$0xff] (!%p427_p10) }
  0x2b   : > { %488 = vset.pattern.permute.xlu1 (!%p427_p10), %v562_v19  ;;  %486 = vset.pattern.permute.xlu0 (!%p427_p10), %v563_v21  ;;  %v564_v22 = vmov (!%p427_p10), 3   ;;  %v565_v23 = vmov (!%p427_p10), 1   ;;  %v267_v26 = vld [vmem:[%s695_s1 + $0x10] sm:$0xff] (!%p427_p10)  ;;  %v268_v27 = vld [vmem:[%s695_s1 + $0x18] sm:$0xff] (!%p427_p10)  ;;  %v428_v47 = vld [vmem:[%s696_s2] ss:$0 sm:$0xff] (!%p427_p10) }
  0x2c   : > { %v247_v11 = vsub.s32 %v244_v8, %v246_v9  ;;  %v309_v31 = vsub.s32 (!%p427_p10), 0, %v246_v9  ;;  %v329_v32 = vsub.s32 (!%p427_p10), 2, %v246_v9  ;;  %v319_v33 = vsub.s32 (!%p427_p10), 1, %v246_v9 }
  0x2d   : > { %v339_v34 = vsub.s32 (!%p427_p10), 3, %v246_v9  ;;  %vm350_vm4 = vcmask (!%p427_p10), 254976  }
  0x2e   : > { %239 = vadd.xlane.f32.xlu0 %v238_v6 }
  0xb7   : > { %v237_v10 = vpop.xlane.xlu0 %236 }
  0xb8   : > { %v248_v13 = vrot.slane %v237_v10, %v247_v11 }
  0xbb   : > { %v240_v12 = vpop.xlane.xlu0 %239  ;;  %262 = sbr.rel (%p427_p10) target bundleno = 391 (0x187), region = 81 }
  0xbc   : > { %v252_v15 = vrot.slane %v240_v12, %v247_v11 }
  0xbe   : > { %v254_v16 = vsel %vm253_vm2, %v252_v15, %v248_v13 }
  0xbf   : > { %v256_v17 = vadd.f32 %v254_v16, %v233_v14 }
  0xc1   : > { %258 = vst.msk [vmem:[#allocation2] sm:$0x3] %vm257_vm3, %v256_v17 }
  0xc8   : > { %v263_v18 = vld [vmem:[#allocation2] sm:$0x3] }
  0xc9   : > { %v264_v20 = vmul.f32 0.00390625, %v263_v18 }
  0xcb   : > { %324 = vperm.xlu1 %488, %v264_v20   ;;  %304 = vperm.xlu0 %486, %v264_v20  }
  0xcf   : > { %489 = vset.pattern.permute.xlu1 %v564_v22  ;;  %487 = vset.pattern.permute.xlu0 %v565_v23 }
  0xd0   : > { %334 = vperm.xlu1 %489, %v264_v20   ;;  %314 = vperm.xlu0 %487, %v264_v20  }
  0xd4   : > { %490 = vset.pattern.permute.xlu0 %v564_v22 }
  0xf9   : > { %270 = vxpose.xlu1.b32.start [1/4] (short) (narrow) %v265_v24, 8 }
  0xfd   : > { %271 = vxpose.xlu1.b32.cont [2/4] (short) (narrow) %v266_v25, 8 }
 0x101   : > { %272 = vxpose.xlu1.b32.cont [3/4] (short) (narrow) %v267_v26, 8 }
 0x105   : > { %273 = vxpose.xlu1.b32.end [4/4] (short) (narrow) %v268_v27, 8 }
 0x14a   : > { %v325_v28 = vpop.permute.xlu1 %324  ;;  %v305_v29 = vpop.permute.xlu0 %304 }
 0x14f   : > { %v335_v30 = vpop.permute.xlu1 %334  ;;  %v315_v36 = vpop.permute.xlu0 %314 }
 0x179   : > { %v286_v35 = vpop.trf.xlu1 }
 0x17a   : > { %v310_v37 = vrot.slane %v286_v35, %v309_v31  ;;  %v330_v38 = vrot.slane %v286_v35, %v329_v32  ;;  %v320_v39 = vrot.slane %v286_v35, %v319_v33  ;;  %v340_v40 = vrot.slane %v286_v35, %v339_v34 }
 0x17c   : > { %v311_v41 = vmul.f32 %v310_v37, %v305_v29  ;;  %v321_v42 = vmul.f32 %v320_v39, %v315_v36  ;;  %v331_v43 = vmul.f32 %v330_v38, %v325_v28  ;;  %v341_v45 = vmul.f32 %v340_v40, %v335_v30 }
 0x17e   : > { %v322_v44 = vadd.f32 %v321_v42, %v311_v41 }
 0x180   : > { %v332_v46 = vadd.f32 %v331_v43, %v322_v44 }
 0x182   : > { %v342_v48 = vadd.f32 %v341_v45, %v332_v46 }
 0x184   : > { %v349_v49 = vadd.f32 %v428_v47, %v342_v48 }
 0x186   : > { %351 = vst.msk [vmem:[#allocation4] sm:$0x3] %vm350_vm4, %v349_v49 }
 0x187 PF: > { %p653_p11 = scmp.eq.s32.totalorder %s419_s17, 1  ;;  %s566_s22 = smov [#allocation4]  }
 0x188   : > { %s361_s23 = sshll.u32 %s566_s22, 4  ;;  %s362_s23 = int_to_ptr.vmem [resolvable:$true] %s361_s23 }
 0x189   : > { %s491_s24 = scalar_lea.vmem %s362_s23, 32  ;;  %p498_p1 = scmp.lt.s32.totalorder %s362_s23, %s362_s23 }
 0x18a   : > { %p492_p12 = scmp.ne.s32.totalorder %s362_s23, %s491_s24  ;;  %p499_p2 = scmp.lt.s32.totalorder %s491_s24, %s491_s24 }
 0x18c   : > { %p493_p13 = pnand %p492_p12, %p653_p11  ;;  %p500_p3 = por %p499_p2, %p498_p1 }
 0x18e   : > { %p494_p0 = pneg %p493_p13 }
 0x190   : > { %p501_p4 = pnand %p500_p3, %p494_p0 }
 0x192   : > { %504 = shalt.err (!%p501_p4)
}
 0x193   : > { %s505_s17 = scalar_lea.hbm %s697_s3, 32 }
 0x194   : > { %p506_p5 = scmp.ne.s32.totalorder %s697_s3, %s505_s17  ;;  %p511_p8 = scmp.lt.u32.totalorder %s505_s17, %s697_s3 }
 0x196   : > { %p507_p6 = pnand %p506_p5, %p653_p11 }
 0x198   : > { %p508_p7 = pneg %p507_p6 }
 0x19a   : > { %p513_p9 = pnand %p511_p8, %p508_p7 }
 0x19c   : > { %516 = shalt.err (!%p513_p9)
}
 0x19d   : > { %434 = dma.vmem_to_hbm [thread:$0]  (%p653_p11), %s362_s23, 32, %s697_s3, [#allocation5]  }
 0x19e   : > { %538 = dma.done.wait (%p653_p11), [#allocation5], 32  }
 0x19f   : > { %540 = vsyncadd (%p653_p11), [#allocation5], 4294967264 }
 0x1a0 PF: > { %s14_s16 = sadd.s32 1, %s559_s16   ;;  %s699_s12 = smov %s547_s13 }
 0x1a1   : > { %p11_p10 = scmp.ge.s32.totalorder %s14_s16, 4   ;;  %s700_s13 = smov %s623_s21 }
 0x1a2   : > { %s701_s14 = smov %s555_s15  ;;  %s702_s15 = smov %s704_s18 }
 0x1a3   :  { %13 = sbr.rel (!%p11_p10) target bundleno = 3 (0x3), region = 114 }
 0x1aa   :  { %374 = vsyncpa [#allocation5], 1 }
 0x1ab   :  { %376 = vsyncpa [#allocation5 + $0x1], 1 }

</bundles_post_ra>
